<compile_context>
chip_gen: v7x
topology: tpu7x:2x2x1
jax: 0.10.0
libtpu: 0.0.40
codegen_flags: <defaults>
</compile_context>

<pallas_src>
import functools

import numpy as np
import jax
import jax.numpy as jnp
from jax.experimental import pallas as pl
from jax.experimental.pallas import tpu as pltpu


def _final_layer_kernel(x_ref, shift_ref, scale1_ref, w_ref, b_ref, o_ref, *,
                        eps, gemm_dtype, dim_size, packed_rows):
    """One (batch, token-tile) step: LayerNorm -> modulate -> projection."""
    x = x_ref[0].astype(jnp.float32)                        # (TN, H)

    # Single-pass LayerNorm stats; clamp the variance so catastrophic
    # cancellation (E[x^2] - E[x]^2 < 0) can never feed rsqrt a negative.
    mean = jnp.mean(x, axis=-1, keepdims=True)
    mean_sq = jnp.mean(x * x, axis=-1, keepdims=True)
    var = jnp.maximum(mean_sq - mean * mean, 0.0)
    xn = (x - mean) * jax.lax.rsqrt(var + eps)

    # modulate: x * (1 + scale) + shift (per-batch rows, precomputed in XLA).
    shift = shift_ref[0].astype(jnp.float32)                # (1, H)
    scale1 = scale1_ref[0].astype(jnp.float32)              # (1, H) == 1 + scale
    xm = xn * scale1 + shift                                # (TN, H)

    # Projection on the MXU.  The weight is lane-padded to a multiple of 128 as
    # an operand only; padded columns are dropped before the store so the HBM
    # output stays at the true dim_size width.
    y = jnp.dot(xm.astype(gemm_dtype), w_ref[...],
                preferred_element_type=jnp.float32)         # (TN, D_mat)
    y = y[:, :dim_size] + b_ref[...].astype(jnp.float32)    # (TN, D)

    if packed_rows is not None:
        # Lane-dense store: 128 // D consecutive tokens per 128-wide row.
        o_ref[0] = y.reshape(packed_rows, 128).astype(o_ref.dtype)
    else:
        o_ref[0] = y.astype(o_ref.dtype)


_PACK_SUPPORTED = True   # flipped once if Mosaic rejects the pack reshape


def final_layer_pallas(x, c, w_mod, b_mod, w_lin, b_lin, *,
                       num_agents, hist_length, seq_length, dim_size,
                       eps=1e-6, gemm_dtype=jnp.bfloat16):
    """FinalLayer forward.

    x: (B, A*(hist+seq), H), c: (B, H).
    Weights are pre-transposed (y = x @ W + b): w_mod (H, 2H), b_mod (2H,),
    w_lin (H, D), b_lin (D,).  Returns (B, A, seq, D) in x.dtype.
    """
    global _PACK_SUPPORTED
    B, N, H = x.shape
    D = dim_size
    T = hist_length + seq_length
    assert N == num_agents * T

    # adaLN modulation once in XLA (tiny); kernel receives shift and 1+scale.
    mod = (jax.nn.silu(c.astype(jnp.float32)) @ w_mod.astype(jnp.float32)
           + b_mod.astype(jnp.float32))                     # (B, 2H)
    shift = mod[:, :H].reshape(B, 1, H)
    scale1 = (1.0 + mod[:, H:]).reshape(B, 1, H)

    # MXU operand: lane-pad the projection weight to a multiple of 128.  It is
    # grid-invariant (constant index map) so it is fetched only once.
    D_mat = -(-D // 128) * 128
    w_p = jnp.zeros((H, D_mat), jnp.float32).at[:, :D].set(
        w_lin.astype(jnp.float32)).astype(gemm_dtype)
    b_p = b_lin.astype(jnp.float32).reshape(1, D)

    # Token-tile size: as large as possible (less per-grid-step overhead) while
    # double-buffered blocks + f32 temporaries stay well inside every chip's
    # scoped-VMEM default (v5e 16 MiB) and v7x's 64 MiB physical VMEM.
    x_item = int(np.dtype(x.dtype).itemsize)
    bytes_per_tok = H * (2 * x_item + 4 * 4) + 128 * 4
    tn_cap = int(min(1024, max(256, (8 * 2**20) // bytes_per_tok)))

    can_pack = (D <= 128) and (128 % D == 0) and ((N * D) % 128 == 0)

    def build_and_run(pack):
        if N <= tn_cap:
            tn = N                               # one full token slab per batch
        else:
            unit = (1024 // D) if pack else 8    # keeps blocks (8,128)-legal
            tn = max(unit, (tn_cap // unit) * unit)
            if tn >= N:
                tn = N
        num_tiles = pl.cdiv(N, tn)

        if pack:
            r_total = N * D // 128
            r_blk = tn * D // 128
            out_shape = jax.ShapeDtypeStruct((B, r_total, 128), x.dtype)
            out_spec = pl.BlockSpec((1, r_blk, 128), lambda b, t: (b, t, 0))
            packed_rows = r_blk
        else:
            out_shape = jax.ShapeDtypeStruct((B, N, D), x.dtype)
            out_spec = pl.BlockSpec((1, tn, D), lambda b, t: (b, t, 0))
            packed_rows = None

        # Rough per-step VMEM bound (Pallas double-buffers the blocks).
        vmem_est = (2 * tn * H * x_item + 4 * tn * H * 4 + 2 * tn * 128 * 4
                    + tn * D_mat * 4
                    + 2 * H * D_mat * int(np.dtype(gemm_dtype).itemsize))
        vmem_limit = int(min(max(2 * vmem_est, 16 * 2**20), 48 * 2**20))

        kernel = functools.partial(_final_layer_kernel, eps=eps,
                                   gemm_dtype=gemm_dtype, dim_size=D,
                                   packed_rows=packed_rows)
        out = pl.pallas_call(
            kernel,
            out_shape=out_shape,
            grid=(B, num_tiles),
            in_specs=[
                pl.BlockSpec((1, tn, H), lambda b, t: (b, t, 0)),   # tokens
                pl.BlockSpec((1, 1, H), lambda b, t: (b, 0, 0)),    # shift
                pl.BlockSpec((1, 1, H), lambda b, t: (b, 0, 0)),    # 1 + scale
                # Grid-invariant weight / bias: fetched once, never re-DMA'd.
                pl.BlockSpec((H, D_mat), lambda b, t: (0, 0)),
                pl.BlockSpec((1, D), lambda b, t: (0, 0)),
            ],
            out_specs=out_spec,
            compiler_params=pltpu.CompilerParams(
                dimension_semantics=("parallel", "parallel"),
                vmem_limit_bytes=vmem_limit),
        )(x, shift, scale1, w_p, b_p)
        return jax.block_until_ready(out)

    if can_pack and _PACK_SUPPORTED:
        try:
            out = build_and_run(True).reshape(B, N, D)   # free contiguous unpack
        except Exception:
            # Mosaic rejected the lane-pack reshape on this backend; fall back
            # to the unpadded layout (same HBM bytes, masked stores) for good.
            _PACK_SUPPORTED = False
            out = build_and_run(False)
    else:
        out = build_and_run(False)

    # The module discards the history tokens; do it on the tiny D-wide output
    # (not on the H-wide activations) so no large HBM copy is materialized.
    return out.reshape(B, num_agents, T, D)[:, :, hist_length:, :]


def final_layer_ref(x, c, w_mod, b_mod, w_lin, b_lin, *,
                    num_agents, hist_length, seq_length, dim_size, eps=1e-6):
    H = x.shape[-1]
    x = x.astype(jnp.float32)
    c = c.astype(jnp.float32)
    mod = jax.nn.silu(c) @ w_mod + b_mod
    shift, scale = mod[:, :H], mod[:, H:]
    mean = x.mean(-1, keepdims=True)
    var = ((x - mean) ** 2).mean(-1, keepdims=True)
    xn = (x - mean) / jnp.sqrt(var + eps)
    xm = xn * (1.0 + scale[:, None, :]) + shift[:, None, :]
    y = xm @ w_lin + b_lin
    y = y.reshape(-1, num_agents, hist_length + seq_length, dim_size)
    return y[:, :, hist_length:, :]


if __name__ == "__main__":
    num_agents, hist_length, seq_length = 4, 2, 6
    dim_size, hidden_size, batch = 8, 32, 2
    N = num_agents * (hist_length + seq_length)   # tokens per sample

    key = jax.random.PRNGKey(0)
    kx, kc, k1, k2, k3, k4 = jax.random.split(key, 6)

    x = jax.random.normal(kx, (batch, N, hidden_size), dtype=jnp.float32)
    c = jax.random.normal(kc, (batch, hidden_size), dtype=jnp.float32)
    # Parameters stored pre-transposed: y = x @ W + b (pass torch_weight.T).
    w_mod = 0.02 * jax.random.normal(k1, (hidden_size, 2 * hidden_size), jnp.float32)
    b_mod = 0.01 * jax.random.normal(k2, (2 * hidden_size,), jnp.float32)
    w_lin = 0.02 * jax.random.normal(k3, (hidden_size, dim_size), jnp.float32)
    b_lin = 0.01 * jax.random.normal(k4, (dim_size,), jnp.float32)

    kwargs = dict(num_agents=num_agents, hist_length=hist_length,
                  seq_length=seq_length, dim_size=dim_size)
    ref = final_layer_ref(x, c, w_mod, b_mod, w_lin, b_lin, **kwargs)

    # f32-GEMM path: tight check against the reference.
    out_f32 = jax.block_until_ready(final_layer_pallas(
        x, c, w_mod, b_mod, w_lin, b_lin, gemm_dtype=jnp.float32, **kwargs))
    assert out_f32.shape == (batch, num_agents, seq_length, dim_size), out_f32.shape
    assert jnp.allclose(out_f32, ref, atol=1e-5, rtol=1e-5), \
        float(jnp.max(jnp.abs(out_f32 - ref)))

    # Default bf16-GEMM path (MXU-native on every TPU generation): looser check.
    out_bf16 = jax.block_until_ready(final_layer_pallas(
        x, c, w_mod, b_mod, w_lin, b_lin, **kwargs))
    assert out_bf16.shape == (batch, num_agents, seq_length, dim_size), out_bf16.shape
    assert jnp.allclose(out_bf16, ref, atol=2e-2, rtol=2e-2), \
        float(jnp.max(jnp.abs(out_bf16 - ref)))

    # bf16 activation stream passes straight through (no upcast outside the
    # kernel); the output dtype follows x.
    out_act = jax.block_until_ready(final_layer_pallas(
        x.astype(jnp.bfloat16), c.astype(jnp.bfloat16),
        w_mod, b_mod, w_lin, b_lin, **kwargs))
    assert out_act.dtype == jnp.bfloat16
    assert jnp.allclose(out_act.astype(jnp.float32), ref, atol=3e-2, rtol=3e-2), \
        float(jnp.max(jnp.abs(out_act.astype(jnp.float32) - ref)))

    print("KERNEL_OK")
</pallas_src>

<mosaic_0001>
module attributes {stable_mosaic.version = 11 : i64} {
  func.func @_final_layer_kernel(%arg0: i32, %arg1: i32, %arg2: memref<1x32x32xf32, #tpu.memory_space<vmem>>, %arg3: memref<1x1x32xf32, #tpu.memory_space<vmem>>, %arg4: memref<1x1x32xf32, #tpu.memory_space<vmem>>, %arg5: memref<32x128xf32, #tpu.memory_space<vmem>>, %arg6: memref<1x8xf32, #tpu.memory_space<vmem>>, %arg7: memref<1x2x128xf32, #tpu.memory_space<vmem>>) attributes {dimension_semantics = [#tpu.dimension_semantics<parallel>, #tpu.dimension_semantics<parallel>], iteration_bounds = array<i64: 2, 1>, scalar_prefetch = 0 : i64, scratch_operands = 0 : i64, tpu.core_type = #tpu.core_type<tc>, window_params = [{transform_indices = @transform_0, window_bounds = array<i64: 1, 32, 32>}, {transform_indices = @transform_1, window_bounds = array<i64: 1, 1, 32>}, {transform_indices = @transform_2, window_bounds = array<i64: 1, 1, 32>}, {pipeline_mode = #tpu.pipeline_mode<synchronous>, transform_indices = @transform_3, window_bounds = array<i64: 32, 128>}, {pipeline_mode = #tpu.pipeline_mode<synchronous>, transform_indices = @transform_4, window_bounds = array<i64: 1, 8>}, {transform_indices = @transform_5, window_bounds = array<i64: 1, 2, 128>}]} {
    %c0 = arith.constant 0 : index
    %c0_0 = arith.constant 0 : index
    %c0_1 = arith.constant 0 : index
    %0 = vector.load %arg2[%c0, %c0_0, %c0_1] : memref<1x32x32xf32, #tpu.memory_space<vmem>>, vector<1x32x32xf32>
    %1 = vector.shape_cast %0 : vector<1x32x32xf32> to vector<32x32xf32>
    %cst = arith.constant dense<0.000000e+00> : vector<32xf32>
    %2 = vector.multi_reduction <add>, %1, %cst [1] : vector<32x32xf32> to vector<32xf32>
    %3 = vector.shape_cast %2 : vector<32xf32> to vector<32x1xf32>
    %cst_2 = arith.constant 3.200000e+01 : f32
    %4 = vector.broadcast %cst_2 : f32 to vector<32x1xf32>
    %5 = arith.divf %3, %4 : vector<32x1xf32>
    %6 = arith.mulf %1, %1 : vector<32x32xf32>
    %cst_3 = arith.constant dense<0.000000e+00> : vector<32xf32>
    %7 = vector.multi_reduction <add>, %6, %cst_3 [1] : vector<32x32xf32> to vector<32xf32>
    %8 = vector.shape_cast %7 : vector<32xf32> to vector<32x1xf32>
    %cst_4 = arith.constant 3.200000e+01 : f32
    %9 = vector.broadcast %cst_4 : f32 to vector<32x1xf32>
    %10 = arith.divf %8, %9 : vector<32x1xf32>
    %11 = arith.mulf %5, %5 : vector<32x1xf32>
    %12 = arith.subf %10, %11 : vector<32x1xf32>
    %cst_5 = arith.constant 0.000000e+00 : f32
    %13 = vector.broadcast %cst_5 : f32 to vector<32x1xf32>
    %14 = arith.maximumf %12, %13 : vector<32x1xf32>
    %15 = vector.broadcast %5 : vector<32x1xf32> to vector<32x32xf32>
    %16 = arith.subf %1, %15 : vector<32x32xf32>
    %cst_6 = arith.constant 9.99999997E-7 : f32
    %17 = vector.broadcast %cst_6 : f32 to vector<32x1xf32>
    %18 = arith.addf %14, %17 : vector<32x1xf32>
    %19 = math.rsqrt %18 : vector<32x1xf32>
    %20 = vector.broadcast %19 : vector<32x1xf32> to vector<32x32xf32>
    %21 = arith.mulf %16, %20 : vector<32x32xf32>
    %c0_7 = arith.constant 0 : index
    %c0_8 = arith.constant 0 : index
    %c0_9 = arith.constant 0 : index
    %22 = vector.load %arg3[%c0_7, %c0_8, %c0_9] : memref<1x1x32xf32, #tpu.memory_space<vmem>>, vector<1x1x32xf32>
    %23 = vector.shape_cast %22 : vector<1x1x32xf32> to vector<1x32xf32>
    %c0_10 = arith.constant 0 : index
    %c0_11 = arith.constant 0 : index
    %c0_12 = arith.constant 0 : index
    %24 = vector.load %arg4[%c0_10, %c0_11, %c0_12] : memref<1x1x32xf32, #tpu.memory_space<vmem>>, vector<1x1x32xf32>
    %25 = vector.shape_cast %24 : vector<1x1x32xf32> to vector<1x32xf32>
    %26 = vector.broadcast %25 : vector<1x32xf32> to vector<32x32xf32>
    %27 = arith.mulf %21, %26 : vector<32x32xf32>
    %28 = vector.broadcast %23 : vector<1x32xf32> to vector<32x32xf32>
    %29 = arith.addf %27, %28 : vector<32x32xf32>
    %c0_13 = arith.constant 0 : index
    %c0_14 = arith.constant 0 : index
    %30 = vector.load %arg5[%c0_13, %c0_14] : memref<32x128xf32, #tpu.memory_space<vmem>>, vector<32x128xf32>
    %cst_15 = arith.constant dense<0.000000e+00> : vector<32x128xf32>
    %31 = tpu.matmul %29, %30, %cst_15 {dimension_numbers = #tpu.dot_dimension_numbers<[1], [0], [0], [1], [0, 0, 1, 1], [], []>} : vector<32x32xf32>, vector<32x128xf32>, vector<32x128xf32> -> vector<32x128xf32>
    %32 = vector.extract_strided_slice %31 {offsets = [0, 0], sizes = [32, 8], strides = [1, 1]} : vector<32x128xf32> to vector<32x8xf32>
    %c0_16 = arith.constant 0 : index
    %c0_17 = arith.constant 0 : index
    %33 = vector.load %arg6[%c0_16, %c0_17] : memref<1x8xf32, #tpu.memory_space<vmem>>, vector<1x8xf32>
    %34 = vector.broadcast %33 : vector<1x8xf32> to vector<32x8xf32>
    %35 = arith.addf %32, %34 : vector<32x8xf32>
    %36 = vector.shape_cast %35 : vector<32x8xf32> to vector<2x128xf32>
    %c0_18 = arith.constant 0 : index
    %c0_19 = arith.constant 0 : index
    %c0_20 = arith.constant 0 : index
    %37 = vector.load %arg7[%c0_18, %c0_19, %c0_20] : memref<1x2x128xf32, #tpu.memory_space<vmem>>, vector<1x2x128xf32>
    %38 = vector.shape_cast %37 : vector<1x2x128xf32> to vector<2x128xf32>
    %39 = vector.shape_cast %36 : vector<2x128xf32> to vector<1x2x128xf32>
    tpu.vector_store %arg7[%c0_18, %c0_19, %c0_20], %39 {strides = array<i32>} : memref<1x2x128xf32, #tpu.memory_space<vmem>>, vector<1x2x128xf32>,
    return
  }
  func.func @transform_0(%arg0: i32, %arg1: i32) -> (i32, i32, i32) {
    %c0_i32 = arith.constant 0 : i32
    %c0_i32_0 = arith.constant 0 : i32
    return %arg0, %arg1, %c0_i32 : i32, i32, i32
  }
  func.func @transform_1(%arg0: i32, %arg1: i32) -> (i32, i32, i32) {
    %c0_i32 = arith.constant 0 : i32
    %c0_i32_0 = arith.constant 0 : i32
    %c0_i32_1 = arith.constant 0 : i32
    return %arg0, %c0_i32, %c0_i32_0 : i32, i32, i32
  }
  func.func @transform_2(%arg0: i32, %arg1: i32) -> (i32, i32, i32) {
    %c0_i32 = arith.constant 0 : i32
    %c0_i32_0 = arith.constant 0 : i32
    %c0_i32_1 = arith.constant 0 : i32
    return %arg0, %c0_i32, %c0_i32_0 : i32, i32, i32
  }
  func.func @transform_3(%arg0: i32, %arg1: i32) -> (i32, i32) {
    %c0_i32 = arith.constant 0 : i32
    %c0_i32_0 = arith.constant 0 : i32
    %c0_i32_1 = arith.constant 0 : i32
    return %c0_i32, %c0_i32_0 : i32, i32
  }
  func.func @transform_4(%arg0: i32, %arg1: i32) -> (i32, i32) {
    %c0_i32 = arith.constant 0 : i32
    %c0_i32_0 = arith.constant 0 : i32
    %c0_i32_1 = arith.constant 0 : i32
    return %c0_i32, %c0_i32_0 : i32, i32
  }
  func.func @transform_5(%arg0: i32, %arg1: i32) -> (i32, i32, i32) {
    %c0_i32 = arith.constant 0 : i32
    %c0_i32_0 = arith.constant 0 : i32
    return %arg0, %arg1, %c0_i32 : i32, i32, i32
  }
}

module attributes {stable_mosaic.version = 11 : i64} {
  func.func @_final_layer_kernel(%arg0: i32, %arg1: i32, %arg2: memref<1x32x32xf32, #tpu.memory_space<vmem>>, %arg3: memref<1x1x32xf32, #tpu.memory_space<vmem>>, %arg4: memref<1x1x32xf32, #tpu.memory_space<vmem>>, %arg5: memref<32x128xf32, #tpu.memory_space<vmem>>, %arg6: memref<1x8xf32, #tpu.memory_space<vmem>>, %arg7: memref<1x32x8xf32, #tpu.memory_space<vmem>>) attributes {dimension_semantics = [#tpu.dimension_semantics<parallel>, #tpu.dimension_semantics<parallel>], iteration_bounds = array<i64: 2, 1>, scalar_prefetch = 0 : i64, scratch_operands = 0 : i64, tpu.core_type = #tpu.core_type<tc>, window_params = [{transform_indices = @transform_0, window_bounds = array<i64: 1, 32, 32>}, {transform_indices = @transform_1, window_bounds = array<i64: 1, 1, 32>}, {transform_indices = @transform_2, window_bounds = array<i64: 1, 1, 32>}, {pipeline_mode = #tpu.pipeline_mode<synchronous>, transform_indices = @transform_3, window_bounds = array<i64: 32, 128>}, {pipeline_mode = #tpu.pipeline_mode<synchronous>, transform_indices = @transform_4, window_bounds = array<i64: 1, 8>}, {transform_indices = @transform_5, window_bounds = array<i64: 1, 32, 8>}]} {
    %c0 = arith.constant 0 : index
    %c0_0 = arith.constant 0 : index
    %c0_1 = arith.constant 0 : index
    %0 = vector.load %arg2[%c0, %c0_0, %c0_1] : memref<1x32x32xf32, #tpu.memory_space<vmem>>, vector<1x32x32xf32>
    %1 = vector.shape_cast %0 : vector<1x32x32xf32> to vector<32x32xf32>
    %cst = arith.constant dense<0.000000e+00> : vector<32xf32>
    %2 = vector.multi_reduction <add>, %1, %cst [1] : vector<32x32xf32> to vector<32xf32>
    %3 = vector.shape_cast %2 : vector<32xf32> to vector<32x1xf32>
    %cst_2 = arith.constant 3.200000e+01 : f32
    %4 = vector.broadcast %cst_2 : f32 to vector<32x1xf32>
    %5 = arith.divf %3, %4 : vector<32x1xf32>
    %6 = arith.mulf %1, %1 : vector<32x32xf32>
    %cst_3 = arith.constant dense<0.000000e+00> : vector<32xf32>
    %7 = vector.multi_reduction <add>, %6, %cst_3 [1] : vector<32x32xf32> to vector<32xf32>
    %8 = vector.shape_cast %7 : vector<32xf32> to vector<32x1xf32>
    %cst_4 = arith.constant 3.200000e+01 : f32
    %9 = vector.broadcast %cst_4 : f32 to vector<32x1xf32>
    %10 = arith.divf %8, %9 : vector<32x1xf32>
    %11 = arith.mulf %5, %5 : vector<32x1xf32>
    %12 = arith.subf %10, %11 : vector<32x1xf32>
    %cst_5 = arith.constant 0.000000e+00 : f32
    %13 = vector.broadcast %cst_5 : f32 to vector<32x1xf32>
    %14 = arith.maximumf %12, %13 : vector<32x1xf32>
    %15 = vector.broadcast %5 : vector<32x1xf32> to vector<32x32xf32>
    %16 = arith.subf %1, %15 : vector<32x32xf32>
    %cst_6 = arith.constant 9.99999997E-7 : f32
    %17 = vector.broadcast %cst_6 : f32 to vector<32x1xf32>
    %18 = arith.addf %14, %17 : vector<32x1xf32>
    %19 = math.rsqrt %18 : vector<32x1xf32>
    %20 = vector.broadcast %19 : vector<32x1xf32> to vector<32x32xf32>
    %21 = arith.mulf %16, %20 : vector<32x32xf32>
    %c0_7 = arith.constant 0 : index
    %c0_8 = arith.constant 0 : index
    %c0_9 = arith.constant 0 : index
    %22 = vector.load %arg3[%c0_7, %c0_8, %c0_9] : memref<1x1x32xf32, #tpu.memory_space<vmem>>, vector<1x1x32xf32>
    %23 = vector.shape_cast %22 : vector<1x1x32xf32> to vector<1x32xf32>
    %c0_10 = arith.constant 0 : index
    %c0_11 = arith.constant 0 : index
    %c0_12 = arith.constant 0 : index
    %24 = vector.load %arg4[%c0_10, %c0_11, %c0_12] : memref<1x1x32xf32, #tpu.memory_space<vmem>>, vector<1x1x32xf32>
    %25 = vector.shape_cast %24 : vector<1x1x32xf32> to vector<1x32xf32>
    %26 = vector.broadcast %25 : vector<1x32xf32> to vector<32x32xf32>
    %27 = arith.mulf %21, %26 : vector<32x32xf32>
    %28 = vector.broadcast %23 : vector<1x32xf32> to vector<32x32xf32>
    %29 = arith.addf %27, %28 : vector<32x32xf32>
    %c0_13 = arith.constant 0 : index
    %c0_14 = arith.constant 0 : index
    %30 = vector.load %arg5[%c0_13, %c0_14] : memref<32x128xf32, #tpu.memory_space<vmem>>, vector<32x128xf32>
    %cst_15 = arith.constant dense<0.000000e+00> : vector<32x128xf32>
    %31 = tpu.matmul %29, %30, %cst_15 {dimension_numbers = #tpu.dot_dimension_numbers<[1], [0], [0], [1], [0, 0, 1, 1], [], []>} : vector<32x32xf32>, vector<32x128xf32>, vector<32x128xf32> -> vector<32x128xf32>
    %32 = vector.extract_strided_slice %31 {offsets = [0, 0], sizes = [32, 8], strides = [1, 1]} : vector<32x128xf32> to vector<32x8xf32>
    %c0_16 = arith.constant 0 : index
    %c0_17 = arith.constant 0 : index
    %33 = vector.load %arg6[%c0_16, %c0_17] : memref<1x8xf32, #tpu.memory_space<vmem>>, vector<1x8xf32>
    %34 = vector.broadcast %33 : vector<1x8xf32> to vector<32x8xf32>
    %35 = arith.addf %32, %34 : vector<32x8xf32>
    %c0_18 = arith.constant 0 : index
    %c0_19 = arith.constant 0 : index
    %c0_20 = arith.constant 0 : index
    %36 = vector.load %arg7[%c0_18, %c0_19, %c0_20] : memref<1x32x8xf32, #tpu.memory_space<vmem>>, vector<1x32x8xf32>
    %37 = vector.shape_cast %36 : vector<1x32x8xf32> to vector<32x8xf32>
    %38 = vector.shape_cast %35 : vector<32x8xf32> to vector<1x32x8xf32>
    tpu.vector_store %arg7[%c0_18, %c0_19, %c0_20], %38 {strides = array<i32>} : memref<1x32x8xf32, #tpu.memory_space<vmem>>, vector<1x32x8xf32>,
    return
  }
  func.func @transform_0(%arg0: i32, %arg1: i32) -> (i32, i32, i32) {
    %c0_i32 = arith.constant 0 : i32
    %c0_i32_0 = arith.constant 0 : i32
    return %arg0, %arg1, %c0_i32 : i32, i32, i32
  }
  func.func @transform_1(%arg0: i32, %arg1: i32) -> (i32, i32, i32) {
    %c0_i32 = arith.constant 0 : i32
    %c0_i32_0 = arith.constant 0 : i32
    %c0_i32_1 = arith.constant 0 : i32
    return %arg0, %c0_i32, %c0_i32_0 : i32, i32, i32
  }
  func.func @transform_2(%arg0: i32, %arg1: i32) -> (i32, i32, i32) {
    %c0_i32 = arith.constant 0 : i32
    %c0_i32_0 = arith.constant 0 : i32
    %c0_i32_1 = arith.constant 0 : i32
    return %arg0, %c0_i32, %c0_i32_0 : i32, i32, i32
  }
  func.func @transform_3(%arg0: i32, %arg1: i32) -> (i32, i32) {
    %c0_i32 = arith.constant 0 : i32
    %c0_i32_0 = arith.constant 0 : i32
    %c0_i32_1 = arith.constant 0 : i32
    return %c0_i32, %c0_i32_0 : i32, i32
  }
  func.func @transform_4(%arg0: i32, %arg1: i32) -> (i32, i32) {
    %c0_i32 = arith.constant 0 : i32
    %c0_i32_0 = arith.constant 0 : i32
    %c0_i32_1 = arith.constant 0 : i32
    return %c0_i32, %c0_i32_0 : i32, i32
  }
  func.func @transform_5(%arg0: i32, %arg1: i32) -> (i32, i32, i32) {
    %c0_i32 = arith.constant 0 : i32
    %c0_i32_0 = arith.constant 0 : i32
    return %arg0, %arg1, %c0_i32 : i32, i32, i32
  }
}

</mosaic_0001>

<bundles_post_ra>
// kernel: tpu_custom_call.1
= control target key start
LH: loop header
LB: loop body
LE: loop exit
PB: predicated region body
PF: predicated region fallthrough
CT: control target
= control target key end

     0   :  { %10 = vsyncpa [#allocation3], 0  ;;  %s1144_s0 = inlined_call_operand.hbm [shape: f32[2,32,32], index: 0, kind: input, shape index: {}]   ;;  %s1145_s1 = inlined_call_operand.vmem [shape: f32[2,1,32], index: 1, kind: input, shape index: {}]   ;;  %s1146_s2 = inlined_call_operand.vmem [shape: f32[2,1,32], index: 2, kind: input, shape index: {}]   ;;  %s1147_s3 = inlined_call_operand.hbm [shape: f32[32,128], index: 3, kind: input, shape index: {}]   ;;  %s1148_s4 = inlined_call_operand.vmem [shape: f32[1,8], index: 4, kind: input, shape index: {}]   ;;  %s1149_s5 = inlined_call_operand.vmem [shape: f32[2,32,8], index: 5, kind: output, shape index: {}]  }
   0x1   :  { %12 = vsyncpa [#allocation3 + $0x1], 0 }
   0x2   :  { %13 = vsyncpa [#allocation5], 0  ;;  %s930_s18 = smov 0   ;;  %s932_s19 = smov 0  }
   0x3   :  { %s934_s20 = smov 0   ;;  %s936_s21 = smov 0  }
   0x4   :  { %s938_s22 = smov 0   ;;  %s940_s23 = smov 0  }
   0x5 LB: > { %s648_s24 = sadd.s32 4294967295, %s894_s23   ;;  %p53_p0 = scmp.ne.s32.totalorder %s878_s19, %s874_s18  ;;  %s894_s23 = sphi %s940_s23, %s19_s23   ;;  %s890_s22 = sphi %s938_s22, %s1166_s22   ;;  %s886_s21 = sphi %s936_s21, %s1165_s21   ;;  %s882_s20 = sphi %s934_s20, %s1164_s20   ;;  %s878_s19 = sphi %s932_s19, %s1163_s19   ;;  %s874_s18 = sphi %s930_s18, %s1162_s18  }
   0x6   : > { %p960_p1 = scmp.eq.s32.totalorder %s648_s24, 0  ;;  %p650_p2 = scmp.ge.s32.totalorder %s894_s23, 1 }
   0x7   : > { %p186_p3 = scmp.lt.s32.totalorder %s894_s23, 3  ;;  %s896_s28 = smov [#allocation4]  }
   0x8   : > { %s1154_s25 = scalar_select %p960_p1, 1, 0 }
   0x9   : > { %p968_p4 = por %p960_p1, %p53_p0  ;;  %p972_p5 = pnand %p650_p2, %p186_p3 }
   0xa   : > { %s198_s29 = sshll.u32 %s896_s28, 4  ;;  %s31_s6 = sadd.s32 1, %s890_s22  ;;  %s199_s29 = int_to_ptr.vmem [resolvable:$true] %s198_s29 }
   0xb   : > { %s1155_s26 = scalar_select %p968_p4, 1, 0 }
   0xc   : > { %s1156_s27 = scalar_select %p972_p5, 1, 0 }
   0xd   : > { %p712_p6 = pneg %p972_p5  ;;  %s782_s9 = scalar_lea.hbm %s1147_s3, 512 }
   0xe   : > { %p783_p8 = scmp.ne.s32.totalorder %s1147_s3, %s782_s9  ;;  %p789_p12 = scmp.lt.u32.totalorder %s782_s9, %s1147_s3 }
   0xf   : > { %p980_p7 = pnand %p712_p6, %p960_p1 }
  0x11   : > { %p784_p9 = pneg %p980_p7 }
  0x13   : > { %p785_p10 = pnand %p784_p9, %p783_p8 }
  0x15   : > { %p786_p11 = pneg %p785_p10 }
  0x17   : > { %p791_p13 = pnand %p789_p12, %p786_p11 }
  0x19   : > { %794 = shalt.err (!%p791_p13)
}
  0x1a   : > { %s795_s14 = scalar_lea.vmem %s199_s29, 512  ;;  %p803_p6 = scmp.lt.s32.totalorder %s199_s29, %s199_s29 }
  0x1b   : > { %p796_p0 = scmp.ne.s32.totalorder %s199_s29, %s795_s14  ;;  %p804_p1 = scmp.lt.s32.totalorder %s795_s14, %s795_s14 }
  0x1d   : > { %p798_p2 = pnand %p796_p0, %p784_p9  ;;  %p805_p4 = por %p804_p1, %p803_p6 }
  0x1f   : > { %p799_p3 = pneg %p798_p2 }
  0x21   : > { %p806_p5 = pnand %p805_p4, %p799_p3 }
  0x23   : > { %809 = shalt.err (!%p806_p5)
}
  0x24   : > { %s897_s15 = smov 128   ;;  %s898_s16 = smov 8  }
  0x25   : > { %715 = dma.hbm_to_vmem [thread:$0]  (!%p980_p7), %s1147_s3, 512, %s199_s29, [#allocation5], %s897_s15, %s897_s15, %s898_s16  }
  0x26   : > { %p33_p1 = scmp.ge.s32.totalorder %s31_s6, 2  ;;  %s40_s24 = sadd.s32 1, %s882_s20 }
  0x27   : > { %p47_p4 = scmp.ne.s32.totalorder %s882_s20, %s878_s19  ;;  %p48_p5 = scmp.eq.s32.totalorder %s894_s23, 0 }
  0x28   : > { %s1168_s6 = smov (%p33_p1, %s31_s6), 0  ;;  %p721_p9 = scmp.lt.s32.totalorder %s894_s23, 2 }
  0x29   : > { %p49_p8 = por %p48_p5, %p47_p4  ;;  %s35_s28 = ssub.s32 %s890_s22, %s1168_s6 }
  0x2a   : > { %s215_s7 = sand.u32 1, %s882_s20   ;;  %p38_p10 = scmp.eq.s32.totalorder %s35_s28, 0 }
  0x2b   : > { %s653_s30 = sshll.u32 %s215_s7, 5  ;;  %s670_s8 = sshll.u32 %s890_s22, 9 }
  0x2c   : > { %s1016_s9 = scalar_select %p38_p10, %s882_s20, %s40_s24  }
  0x2d   : > { %s1021_s29 = scalar_lea.hbm %s1144_s0, %s670_s8  ;;  %s219_s12 = scalar_lea.vmem [#allocation2], %s653_s30 }
  0x2e   : > { %s228_s13 = sshll.u32 %s219_s12, 4  ;;  %p1023_p7 = pnand %p721_p9, %p49_p8  ;;  %s1027_s13 = int_to_ptr.vmem [resolvable:$true] %s228_s13 }
  0x2f   : > { %s1029_s17 = scalar_lea.sflag [#allocation3], %s215_s7  ;;  %s810_s18 = scalar_lea.hbm %s1021_s29, 512 }
  0x30   : > { %p811_p11 = scmp.ne.s32.totalorder %s1021_s29, %s810_s18  ;;  %p812_p12 = pneg %p1023_p7 }
  0x31   : > { %s815_s30 = scalar_lea.hbm %s1144_s0, 1024  ;;  %p816_p2 = scmp.lt.u32.totalorder %s1021_s29, %s1144_s0 }
  0x32   : > { %p813_p13 = pnand %p812_p12, %p811_p11  ;;  %p817_p3 = scmp.lt.u32.totalorder %s815_s30, %s810_s18 }
  0x33   : > { %p819_p1 = scmp.lt.u32.totalorder %s810_s18, %s1021_s29 }
  0x34   : > { %p814_p0 = pneg %p813_p13  ;;  %p818_p6 = por %p817_p3, %p816_p2 }
  0x36   : > { %p820_p4 = por %p819_p1, %p818_p6 }
  0x38   : > { %p821_p5 = pnand %p820_p4, %p814_p0 }
  0x3a   : > { %824 = shalt.err (!%p821_p5)
}
  0x3b   : > { %s825_s7 = scalar_lea.vmem %s1027_s13, 512  ;;  %s899_s11 = smov [#allocation2]  }
  0x3c   : > { %p826_p8 = scmp.ne.s32.totalorder %s1027_s13, %s825_s7  ;;  %s830_s12 = sshll.u32 %s899_s11, 4  ;;  %s831_s12 = int_to_ptr.vmem [resolvable:$false] %s830_s12 }
  0x3d   : > { %s832_s24 = scalar_lea.vmem %s831_s12, 1024  ;;  %p833_p11 = scmp.lt.s32.totalorder %s1027_s13, %s831_s12 }
  0x3e   : > { %p828_p9 = pnand %p826_p8, %p812_p12  ;;  %p834_p13 = scmp.lt.s32.totalorder %s832_s24, %s825_s7 }
  0x40   : > { %p829_p10 = pneg %p828_p9  ;;  %p835_p2 = por %p834_p13, %p833_p11 }
  0x42   : > { %p836_p3 = pnand %p835_p2, %p829_p10 }
  0x44   : > { %839 = shalt.err (!%p836_p3)
}
  0x45   : > { %719 = dma.hbm_to_vmem [thread:$0]  (!%p1023_p7), %s1021_s29, 512, %s1027_s13, %s1029_s17, %s897_s15, %s897_s15, %s898_s16  }
  0x46   : > { %p1159_p12 = scmp.ne.s32.totalorder %s1156_s27, 0 }
  0x47   : > { %s254_s18 = sand.u32 (!%p1159_p12), 1, %s878_s19   ;;  %p1160_p0 = scmp.ne.s32.totalorder (!%p1159_p12), %s1155_s26, 0 }
  0x48   : > { %252 = sbr.rel (%p1159_p12) target bundleno = 481 (0x1e1), region = 40  ;;  %s657_s28 = sshll.u32 (!%p1159_p12), %s254_s18, 5 }
  0x49   : > { %s255_s30 = scalar_lea.sflag (!%p1159_p12), [#allocation3], %s254_s18  ;;  %s258_s8 = scalar_lea.vmem (!%p1159_p12), [#allocation2], %s657_s28 }
  0x4f   : > { %865 = dma.done.wait (%p1160_p0), %s255_s30, 512  }
  0x50   : > { %867 = vsyncadd (%p1160_p0), %s255_s30, 4294966784  ;;  %p1161_p6 = scmp.ne.s32.totalorder %s1154_s25, 0 }
  0x52   : > { %869 = dma.done.wait (%p1161_p6), [#allocation5], 512  }
  0x53   : > { %871 = vsyncadd (%p1161_p6), [#allocation5], 4294966784  ;;  %vm320_vm0 = vcmask 261120   ;;  %v1071_v0 = vld [vmem:[%s258_s8 + $0x8] sm:$0xff]  ;;  %v1073_v1 = vld [vmem:[%s258_s8] sm:$0xff]  ;;  %p300_p7 = scmp.lt.s32.totalorder %s886_s21, 1 }
  0x54   : > { %v1075_v2 = vld [vmem:[%s258_s8 + $0x18] sm:$0xff]  ;;  %v324_v3 = vsel %vm320_vm0, %v1071_v0, 0.0  ;;  %v321_v4 = vsel %vm320_vm0, %v1073_v1, 0.0  ;;  %v1081_v5 = vld [vmem:[%s258_s8 + $0x10] sm:$0xff]  ;;  %v338_v9 = vmul.f32 %v1073_v1, %v1073_v1  ;;  %v339_v13 = vmul.f32 %v1071_v0, %v1071_v0  ;;  %v408_v16 = vld [vmem:[#allocation4] sm:$0xff] }
  0x55   : > { %325 = vadd.xlane.f32.xlu1 %v324_v3  ;;  %322 = vadd.xlane.f32.xlu0 %v321_v4  ;;  %v330_v6 = vsel %vm320_vm0, %v1075_v2, 0.0  ;;  %v327_v7 = vsel %vm320_vm0, %v1081_v5, 0.0  ;;  %v340_v8 = vmul.f32 %v1081_v5, %v1081_v5  ;;  %v341_v12 = vmul.f32 %v1075_v2, %v1075_v2  ;;  %v409_v17 = vld [vmem:[#allocation4 + $0x8] sm:$0xff]  ;;  %v410_v18 = vld [vmem:[#allocation4 + $0x10] sm:$0xff]  ;;  %v411_v20 = vld [vmem:[#allocation4 + $0x18] sm:$0xff]  ;;  %s1170_s21 = smov (!%p300_p7, %s886_s21), 1 }
  0x56   : > { %v342_v11 = vsel %vm320_vm0, %v338_v9, 0.0  ;;  %v345_v15 = vsel %vm320_vm0, %v339_v13, 0.0  ;;  %v694_v19 = vpack.c.bf16 %v409_v17, %v408_v16  ;;  %v698_v21 = vpack.c.bf16 %v411_v20, %v410_v18  ;;  %s305_s27 = scalar_lea.vmem %s1146_s2, %s1170_s21  ;;  %s302_s29 = scalar_lea.vmem %s1145_s1, %s1170_s21 }
  0x57   : > { %v348_v10 = vsel %vm320_vm0, %v340_v8, 0.0  ;;  %v351_v14 = vsel %vm320_vm0, %v341_v12, 0.0  ;;  %v661_v57 = vld [vmem:[%s305_s27] ss:$0 sm:$0xff]  ;;  %s671_s13 = sshll.u32 %s1170_s21, 5  ;;  %vm520_vm1 = vcmask 64512  }
  0x58   : > { %695 = vmatprep.subr.bf16.mxu0 %v694_v19  ;;  %702 = vmatprep.subr.bf16.mxu1 %v694_v19  ;;  %v662_v61 = vld [vmem:[%s302_s29] ss:$0 sm:$0xff]  ;;  %s314_s11 = scalar_lea.vmem %s1149_s5, %s671_s13 }
  0x59   : > { %331 = vadd.xlane.f32.xlu1 %v330_v6  ;;  %328 = vadd.xlane.f32.xlu0 %v327_v7 }
  0x5a   : > { %697 = vmatpush3.bf16.msra.mxu0 %v694_v19  ;;  %704 = vmatpush3.bf16.msra.mxu1 %v694_v19 }
  0x5b   : > { %699 = vmatprep.subr.bf16.mxu0 %v698_v21  ;;  %703 = vmatprep.subr.bf16.mxu1 %v698_v21 }
  0x5d   : > { %349 = vadd.xlane.f32.xlu1 %v348_v10  ;;  %343 = vadd.xlane.f32.xlu0 %v342_v11 }
  0x5e   : > { %701 = vmatpush3.bf16.msra.mxu0 %v698_v21  ;;  %705 = vmatpush3.bf16.msra.mxu1 %v698_v21 }
  0x61   : > { %352 = vadd.xlane.f32.xlu1 %v351_v14  ;;  %346 = vadd.xlane.f32.xlu0 %v345_v15 }
  0xe2   : > { %v326_v22 = vpop.xlane.xlu1 %325  ;;  %v323_v23 = vpop.xlane.xlu0 %322 }
  0xe3   : > { %v334_v26 = vmul.f32 0.03125, %v323_v23  ;;  %v335_v28 = vmul.f32 0.03125, %v326_v22 }
  0xe5   : > { %v358_v32 = vmul.f32 %v334_v26, %v334_v26  ;;  %v359_v38 = vmul.f32 %v335_v28, %v335_v28  ;;  %v370_v56 = vsub.f32 %v1073_v1, %v334_v26  ;;  %v371_v4 = vsub.f32 %v1071_v0, %v335_v28  ;;  %v667_v0 = vld [vmem:[%s1148_s4] ss:$0 sm:$0xff] }
  0xe6   : > { %v332_v24 = vpop.xlane.xlu1 %331  ;;  %v329_v25 = vpop.xlane.xlu0 %328 }
  0xe7   : > { %v336_v27 = vmul.f32 0.03125, %v329_v25  ;;  %v337_v29 = vmul.f32 0.03125, %v332_v24 }
  0xe9   : > { %v360_v33 = vmul.f32 %v336_v27, %v336_v27  ;;  %v361_v39 = vmul.f32 %v337_v29, %v337_v29  ;;  %v372_v54 = vsub.f32 %v1081_v5, %v336_v27  ;;  %v373_v62 = vsub.f32 %v1075_v2, %v337_v29 }
  0xea   : > { %v350_v30 = vpop.xlane.xlu1 %349  ;;  %v344_v31 = vpop.xlane.xlu0 %343 }
  0xeb   : > { %v356_v34 = vmul.f32 0.03125, %v350_v30  ;;  %v354_v35 = vmul.f32 0.03125, %v344_v31 }
  0xed   : > { %v364_v36 = vsub.f32 %v356_v34, %v360_v33  ;;  %v362_v37 = vsub.f32 %v354_v35, %v358_v32 }
  0xee   : > { %v353_v40 = vpop.xlane.xlu1 %352  ;;  %v347_v41 = vpop.xlane.xlu0 %346 }
  0xef   : > { %v368_v42 = vmax.f32 %v364_v36, 0.0  ;;  %v366_v43 = vmax.f32 %v362_v37, 0.0  ;;  %v357_v44 = vmul.f32 0.03125, %v353_v40  ;;  %v355_v45 = vmul.f32 0.03125, %v347_v41 }
  0xf1   : > { %v376_v46 = vadd.f32 1e-06, %v368_v42  ;;  %v374_v47 = vadd.f32 1e-06, %v366_v43  ;;  %v365_v48 = vsub.f32 %v357_v44, %v361_v39  ;;  %v363_v49 = vsub.f32 %v355_v45, %v359_v38 }
  0xf3   : > { %774 = vrsqrt.f32 %v376_v46  ;;  %v369_v50 = vmax.f32 %v365_v48, 0.0  ;;  %v367_v51 = vmax.f32 %v363_v49, 0.0 }
  0xf4   : > { %776 = vrsqrt.f32 %v374_v47 }
  0xf5   : > { %v377_v52 = vadd.f32 1e-06, %v369_v50  ;;  %v375_v53 = vadd.f32 1e-06, %v367_v51 }
  0xf7   : > { %778 = vrsqrt.f32 %v377_v52 }
  0xf8   : > { %780 = vrsqrt.f32 %v375_v53 }
  0xfd   : > { %v775_v55 = vpop.eup %774 }
  0xfe   : > { %v777_v58 = vpop.eup %776  ;;  %v384_v59 = vmul.f32 %v775_v55, %v372_v54 }
  0xff   : > { %v382_v60 = vmul.f32 %v777_v58, %v370_v56 }
 0x100   : > { %v396_v63 = vmul.f32 %v661_v57, %v384_v59 }
 0x101   : > { %v779_v3 = vpop.eup %778  ;;  %v394_v5 = vmul.f32 %v661_v57, %v382_v60 }
 0x102   : > { %v781_v6 = vpop.eup %780  ;;  %v406_v7 = vadd.f32 %v662_v61, %v396_v63  ;;  %v385_v8 = vmul.f32 %v779_v3, %v373_v62 }
 0x103   : > { %v404_v9 = vadd.f32 %v662_v61, %v394_v5  ;;  %v383_v10 = vmul.f32 %v781_v6, %v371_v4 }
 0x104   : > { %691 = vmatprep.mubr.msk.f32.mxu1 %vm320_vm0, %v406_v7  ;;  %v397_v1 = vmul.f32 %v661_v57, %v385_v8 }
 0x105   : > { %688 = vmatprep.mubr.msk.f32.mxu0 %vm320_vm0, %v404_v9  ;;  %v395_v11 = vmul.f32 %v661_v57, %v383_v10 }
 0x106   : > { %v407_v12 = vadd.f32 %v662_v61, %v397_v1 }
 0x107   : > { %v405_v13 = vadd.f32 %v662_v61, %v395_v11 }
 0x108   : > { %692 = vmatmul.mubr.msk.f32.vlgmr.msra.gmra.mrb[0].mxu1 %vm320_vm0, %v407_v12 }
 0x109   : > { %689 = vmatmul.mubr.msk.f32.vlgmr.msra.gmra.mrb[0].mxu0 %vm320_vm0, %v405_v13 }
 0x1db   : > { %v693_v2 = vpop.f32.mrb[0].mxu1 }
 0x1dc   : > { %v690_v14 = vpop.f32.mrb[0].mxu0  ;;  %v519_v15 = vadd.f32 %v693_v2, %v667_v0  ;;  %v500_v16 = vpop.f32.mrb[1].mxu1 }
 0x1dd   : > { %v517_v17 = vadd.f32 %v690_v14, %v667_v0  ;;  %v490_v18 = vpop.f32.mrb[1].mxu0  ;;  %v518_v19 = vadd.f32 %v667_v0, %v500_v16 }
 0x1de   : > { %524 = vst.msk [vmem:[%s314_s11 + $0x18] sm:$0xff] %vm520_vm1, %v519_v15  ;;  %v516_v20 = vadd.f32 %v667_v0, %v490_v18 }
 0x1df   : > { %522 = vst.msk [vmem:[%s314_s11 + $0x8] sm:$0xff] %vm520_vm1, %v517_v17  ;;  %523 = vst.msk [vmem:[%s314_s11 + $0x10] sm:$0xff] %vm520_vm1, %v518_v19 }
 0x1e0   : > { %521 = vst.msk [vmem:[%s314_s11] sm:$0xff] %vm520_vm1, %v516_v20 }
 0x1e1 PF: > { %s19_s23 = sadd.s32 1, %s894_s23   ;;  %s1162_s18 = smov %s878_s19 }
 0x1e2   : > { %p16_p1 = scmp.ge.s32.totalorder %s19_s23, 4   ;;  %s1163_s19 = smov %s882_s20 }
 0x1e3   : > { %s1164_s20 = smov %s1016_s9  ;;  %s1165_s21 = smov %s890_s22 }
 0x1e4   : > { %s1166_s22 = smov %s1168_s6  ;;  %18 = sbr.rel (!%p16_p1) target bundleno = 5 (0x5), region = 90 }
 0x1eb   :  { %555 = vsyncpa [#allocation3], 1 }
 0x1ec   :  { %557 = vsyncpa [#allocation3 + $0x1], 1 }
 0x1ed   :  { %558 = vsyncpa [#allocation5], 1 }

</bundles_post_ra>
